<compile_context>
chip_gen: v5e
topology: v5e:2x2
jax: 0.10.0
libtpu: 0.0.40
codegen_flags: <defaults>
</compile_context>

<pallas_src>
import math
import jax
import jax.numpy as jnp
from jax.experimental import pallas as pl
from jax.experimental.pallas import tpu as pltpu

# ----------------------- configuration (mirrors __init__ at small scale) ----------------
MAX_TIME = 1.0
TIME_ENC_N = 10000.0
TIME_EMB_MLP = [32, 32, 32]          # two Linear layers with SiLU in between
N_SCALES = 2                         # len(r_cluster_multiscale)
N_SCALARS = 8                        # irreps_query_edf = 8x0e + 8x1e
N_VECTORS = 8
QUERY_EDF_DIM = N_SCALARS + 3 * N_VECTORS   # 32
KEY_EDF_DIM = QUERY_EDF_DIM                  # 32 (must match for the energy residual)
KEY_FEAT_DIM = 32                            # per-scale key point feature width
LIN_MULT = 1.0
ANG_MULT = 1.0
ENERGY_RESCALE = 1.0 / float(KEY_EDF_DIM)    # energy_rescale_factor
R_CLUSTER = (1.0, 2.0)                       # surrogate per-scale length scales

LANE = 128
XDIM = 8                                     # xyz coords padded 3 -> 8 for a clean MXU K dim
VMEM_LIMIT = 48 * 1024 * 1024                # < v7x 64 MiB physical, well under v5e/v6e 128 MiB
VMEM_ROW_BUDGET = 16 * 1024 * 1024           # budget for row-tiled buffers + softmax scratch

Q_INDICES = jnp.array([[1, 2, 3], [0, 3, 2], [3, 0, 1], [2, 1, 0]], dtype=jnp.int32)
Q_FACTOR = jnp.array([[-0.5, -0.5, -0.5], [0.5, -0.5, 0.5],
                      [0.5, 0.5, -0.5], [-0.5, 0.5, 0.5]], dtype=jnp.float32)


# ----------------------------- small shape helpers ---------------------------------------
def _round_up(n, m):
    return ((n + m - 1) // m) * m


def _row_cap(NP):
    """VMEM-derived row-tile cap (worst case = backward): per-row softmax scratch ~6*NP f32
    plus the lane-padded double-buffered row inputs/outputs."""
    per_row_io = 6 * 2 * LANE * 4            # xq, qf, g, e, dx, dqf (each lane-pads to 128), x2 bufs
    per_row_scratch = 6 * NP * 4             # logits / exp / attn / gA / gl live per row
    cap = VMEM_ROW_BUDGET // (per_row_io + per_row_scratch)
    return max(8, min(1024, (cap // 8) * 8))


def _tile(n, cap):
    """Row tile: multiple of 8, <= cap, and >= 2 grid steps when possible so the 'parallel'
    row axis can shard across v7x's two TensorCores."""
    n8 = _round_up(max(n, 1), 8)
    if n8 <= 8:
        return 8, 8
    t = max(8, min(cap, _round_up((n8 + 1) // 2, 8)))
    return t, _round_up(n8, t)


def _pad_axis0(x, n):
    if x.shape[0] == n:
        return x
    pad = [(0, n - x.shape[0])] + [(0, 0)] * (x.ndim - 1)
    return jnp.pad(x, pad)


def _pad_last(x, n):
    if x.shape[-1] == n:
        return x
    pad = [(0, 0)] * (x.ndim - 1) + [(0, 0 + n - x.shape[-1])]
    return jnp.pad(x, pad)


# ------------------- fused field + energy kernel (forward) -------------------------------
# Per row (one transformed query point):
#   logits_s = x @ (2/r_s^2 * k_s)^T - ||k_s||^2 / r_s^2     (||x||^2 dropped: softmax shift-inv)
#   kf       = concat_s softmax(logits_s)  @  concat_s (key_feat_s @ Wkey_s)   (single MXU mix)
#   e        = rescale * || kf - qf_eff ||^2                                   (per-row scalar)
def _make_fwd_kernel(np_pad):
    def kernel(xq_ref, qf_ref, kxT_ref, kl_ref, kmix_ref, e_ref):
        x = xq_ref[...]                                                       # (rT, XDIM) f32
        logits = jnp.dot(x, kxT_ref[...], preferred_element_type=jnp.float32) + kl_ref[...]
        attns = []
        for s in range(N_SCALES):                                             # static unroll
            lg = logits[:, s * np_pad:(s + 1) * np_pad]                       # tile-aligned slice
            m = jnp.max(lg, axis=-1, keepdims=True)
            ex = jnp.exp(lg - m)                                              # padded cols -> 0
            attns.append(ex * pl.reciprocal(jnp.sum(ex, axis=-1, keepdims=True), approx=True))
        attn = jnp.concatenate(attns, axis=-1).astype(jnp.bfloat16)           # (rT, NP)
        kf = jnp.dot(attn, kmix_ref[...].astype(jnp.bfloat16),
                     preferred_element_type=jnp.float32)                      # (rT, 32) f32 acc
        d = kf - qf_ref[...]
        e_ref[...] = jnp.sum(d * d, axis=-1, keepdims=True) * ENERGY_RESCALE  # (rT, 1)
    return kernel


# ------------------- fused field + energy kernel (backward) ------------------------------
# Recomputes the softmax (exact normalization, f32) and produces dE/dx and dE/dqf_eff in one
# pass; df == -dk is emitted once (no redundant writeback), kf/attn never touch HBM.
def _make_bwd_kernel(np_pad):
    def kernel(xq_ref, qf_ref, g_ref, kxT_ref, kl_ref, kmix_ref, kmixT_ref, kxN_ref,
               dx_ref, dqf_ref):
        x = xq_ref[...]
        logits = jnp.dot(x, kxT_ref[...], preferred_element_type=jnp.float32) + kl_ref[...]
        attns = []
        for s in range(N_SCALES):
            lg = logits[:, s * np_pad:(s + 1) * np_pad]
            m = jnp.max(lg, axis=-1, keepdims=True)
            ex = jnp.exp(lg - m)
            attns.append(ex / jnp.sum(ex, axis=-1, keepdims=True))            # exact softmax
        attn = jnp.concatenate(attns, axis=-1)                                # (rT, NP) f32
        kf = jnp.dot(attn, kmix_ref[...], preferred_element_type=jnp.float32)
        d = kf - qf_ref[...]                                                  # (rT, 32)
        cot_kf = (2.0 * ENERGY_RESCALE) * g_ref[...] * d                      # (rT, 32)
        dqf_ref[...] = -cot_kf                                                # df == -dk
        gA = jnp.dot(cot_kf, kmixT_ref[...], preferred_element_type=jnp.float32)   # (rT, NP)
        gls = []
        for s in range(N_SCALES):                                             # per-scale softmax bwd
            a_s = attns[s]
            gA_s = gA[:, s * np_pad:(s + 1) * np_pad]
            gls.append(a_s * (gA_s - jnp.sum(gA_s * a_s, axis=-1, keepdims=True)))
        gl = jnp.concatenate(gls, axis=-1)                                    # (rT, NP)
        dx_ref[...] = jnp.dot(gl, kxN_ref[...], preferred_element_type=jnp.float32)  # (rT, XDIM)
    return kernel


def _const_spec(shape):
    nd = len(shape)
    return pl.BlockSpec(shape, lambda i: (0,) * nd)


def _fused_fwd_call(xq, qf, kxT, kl, kmix):
    rows = xq.shape[0]
    NP = kxT.shape[-1]
    np_pad = NP // N_SCALES
    rT, rowsP = _tile(rows, _row_cap(NP))
    xqp = _pad_axis0(_pad_last(xq, XDIM), rowsP)
    qfp = _pad_axis0(qf, rowsP)
    e = pl.pallas_call(
        _make_fwd_kernel(np_pad),
        grid=(rowsP // rT,),
        in_specs=[pl.BlockSpec((rT, XDIM), lambda i: (i, 0)),
                  pl.BlockSpec((rT, KEY_EDF_DIM), lambda i: (i, 0)),
                  _const_spec((XDIM, NP)),
                  _const_spec((1, NP)),
                  _const_spec((NP, KEY_EDF_DIM))],
        out_specs=pl.BlockSpec((rT, 1), lambda i: (i, 0)),
        out_shape=jax.ShapeDtypeStruct((rowsP, 1), jnp.float32),
        compiler_params=pltpu.CompilerParams(
            dimension_semantics=("parallel",), vmem_limit_bytes=VMEM_LIMIT),
    )(xqp, qfp, kxT, kl, kmix)
    return e[:rows, 0]


def _fused_bwd_call(xq, qf, g, kxT, kl, kmix):
    rows = xq.shape[0]
    NP = kxT.shape[-1]
    np_pad = NP // N_SCALES
    rT, rowsP = _tile(rows, _row_cap(NP))
    xqp = _pad_axis0(_pad_last(xq, XDIM), rowsP)
    qfp = _pad_axis0(qf, rowsP)
    gp = _pad_axis0(g.reshape(rows, 1).astype(jnp.float32), rowsP)
    kmixT = kmix.T                     # pre-transposed constants: plain (M,K)x(K,N) dots in-kernel
    kxN = kxT.T
    dx, dqf = pl.pallas_call(
        _make_bwd_kernel(np_pad),
        grid=(rowsP // rT,),
        in_specs=[pl.BlockSpec((rT, XDIM), lambda i: (i, 0)),
                  pl.BlockSpec((rT, KEY_EDF_DIM), lambda i: (i, 0)),
                  pl.BlockSpec((rT, 1), lambda i: (i, 0)),
                  _const_spec((XDIM, NP)),
                  _const_spec((1, NP)),
                  _const_spec((NP, KEY_EDF_DIM)),
                  _const_spec((KEY_EDF_DIM, NP)),
                  _const_spec((NP, XDIM))],
        out_specs=[pl.BlockSpec((rT, XDIM), lambda i: (i, 0)),
                   pl.BlockSpec((rT, KEY_EDF_DIM), lambda i: (i, 0))],
        out_shape=(jax.ShapeDtypeStruct((rowsP, XDIM), jnp.float32),
                   jax.ShapeDtypeStruct((rowsP, KEY_EDF_DIM), jnp.float32)),
        compiler_params=pltpu.CompilerParams(
            dimension_semantics=("parallel",), vmem_limit_bytes=VMEM_LIMIT),
    )(xqp, qfp, gp, kxT, kl, kmix, kmixT, kxN)
    return dx[:rows, :3], dqf[:rows]


@jax.custom_vjp
def fused_energy(xq, qf, kxT, kl, kmix):
    """xq: (rows, 3), qf: (rows, 32) -> per-row (unweighted) energy (rows,)."""
    return _fused_fwd_call(xq, qf, kxT, kl, kmix)


def _fe_vjp_fwd(xq, qf, kxT, kl, kmix):
    return _fused_fwd_call(xq, qf, kxT, kl, kmix), (xq, qf, kxT, kl, kmix)


def _fe_vjp_bwd(res, g):
    xq, qf, kxT, kl, kmix = res
    dx, dqf = _fused_bwd_call(xq, qf, g, kxT, kl, kmix)
    # TODO(synk): cotangents for the key-cloud/weight constants are not implemented (the module's
    # forward only differentiates w.r.t. T, so these are never used); returned as zeros.
    return dx, dqf, jnp.zeros_like(kxT), jnp.zeros_like(kl), jnp.zeros_like(kmix)


fused_energy.defvjp(_fe_vjp_fwd, _fe_vjp_bwd)


# ----------------------------- plain-JAX glue helpers ------------------------------------
def sinusoidal_time_emb(t, dim=TIME_EMB_MLP[0], max_val=MAX_TIME, n=TIME_ENC_N):
    # Approximates diffusion_edf.SinusoidalPositionEmbeddings(dim, max_val, n).
    half = dim // 2
    freqs = jnp.exp(-math.log(n) * jnp.arange(half, dtype=jnp.float32) / (half - 1))
    args = (t / max_val)[:, None] * n * freqs[None, :]
    return jnp.concatenate([jnp.sin(args), jnp.cos(args)], axis=-1)


def quat_to_rotmat(q):
    # q: (..., 4), real-first (w, x, y, z), unit-norm.
    w, x, y, z = q[..., 0], q[..., 1], q[..., 2], q[..., 3]
    R = jnp.stack([
        1 - 2 * (y * y + z * z), 2 * (x * y - z * w),     2 * (x * z + y * w),
        2 * (x * y + z * w),     1 - 2 * (x * x + z * z), 2 * (y * z - x * w),
        2 * (x * z - y * w),     2 * (y * z + x * w),     1 - 2 * (x * x + y * y),
    ], axis=-1)
    return R.reshape(q.shape[:-1] + (3, 3))


def quaternion_invert(q):
    return q * jnp.array([1.0, -1.0, -1.0, -1.0], dtype=q.dtype)


def quaternion_apply(q, v):
    qvec = q[..., 1:]
    uv = jnp.cross(qvec, v)
    uuv = jnp.cross(qvec, uv)
    return v + 2.0 * (q[..., :1] * uv + uuv)


# ----------------------------- parameter initialization ----------------------------------
def init_params(key):
    d0, d1, d2 = TIME_EMB_MLP
    kiter = iter(jax.random.split(key, 64))

    def lin(din, dout):
        kw, kb = jax.random.split(next(kiter))
        bound = 1.0 / math.sqrt(din)
        W = jax.random.uniform(kw, (din, dout), jnp.float32, -bound, bound)
        b = jax.random.uniform(kb, (1, dout), jnp.float32, -bound, bound)
        return W, b

    params = {"time_mlps": [], "field_Wkey": [], "field_Wdst": []}
    for _ in range(N_SCALES):
        W1, b1 = lin(d0, d1)
        W2, b2 = lin(d1, d2)
        params["time_mlps"].append((W1, b1, W2, b2))     # exist in the module, unused when
    W1, b1 = lin(d0, d1)                                 # edge_time_encoding=False
    W2, b2 = lin(d1, d2)
    params["query_time_mlp"] = (W1, b1, W2, b2)
    for _ in range(N_SCALES):
        params["field_Wkey"].append(lin(KEY_FEAT_DIM, KEY_EDF_DIM)[0])
        params["field_Wdst"].append(lin(d2, KEY_EDF_DIM)[0])
    params["field_bias"] = jnp.zeros((KEY_EDF_DIM,), jnp.float32)
    return params


# --------------------------------- forward pass -------------------------------------------
def ebm_score_head_forward(params, Ts, key_pcds, query_x, query_f, query_w, time):
    nT = Ts.shape[0]
    nQ = query_x.shape[0]

    # ---------------- T-invariant precompute, hoisted out of the grad closure --------------
    # Tiny (nT,32)x(32,32) time MLP stays in plain jnp so XLA fuses it with the sin/cos embed
    # (a dedicated pallas_call's dispatch cost exceeds its compute).
    time_enc = sinusoidal_time_emb(time)                                             # (nT, d0)
    W1, b1, W2, b2 = params["query_time_mlp"]
    h = time_enc @ W1 + b1
    h = h * jax.nn.sigmoid(h)                                                        # SiLU
    q_time_emb = h @ W2 + b2                                                         # (nT, d2)
    # NOTE: the module's per-scale time MLPs are only consumed when edge_time_encoding=True;
    # with edge_time_encoding=False their output is dead compute and is skipped here.

    # bias + dst-feature contribution of the field surrogate is independent of the query point:
    # compute at (nT, d) and fold into the energy residual.
    base = params["field_bias"][None, :]
    for s in range(N_SCALES):
        base = base + q_time_emb @ params["field_Wdst"][s]                           # (nT, D)

    # Per-scale constants, concatenated along the key-point axis (one logits matmul + one mix
    # matmul per kernel step).  kmix keeps only the 32 useful columns (no 128-lane padding).
    #   logits(x) = x @ (2/r^2 k)^T - ||k||^2/r^2   (||x||^2 dropped: softmax shift-invariance)
    #   kmix      = key_features @ Wkey             (associativity: attn @ (kf @ Wkey))
    np_pad = max(_round_up(kx.shape[0], LANE) for kx, _ in key_pcds)
    NP = N_SCALES * np_pad
    kxT_all = jnp.zeros((XDIM, NP), jnp.float32)
    kl_all = jnp.full((1, NP), -1e30, jnp.float32)                                   # pad -> attn 0
    kmix_all = jnp.zeros((NP, KEY_EDF_DIM), jnp.float32)
    for s in range(N_SCALES):
        kx, kf = key_pcds[s]                                                         # (nP,3),(nP,Dk)
        nP = kx.shape[0]
        off = s * np_pad
        inv_r2 = 1.0 / (R_CLUSTER[s] ** 2)
        kxT_all = kxT_all.at[:3, off:off + nP].set((2.0 * inv_r2) * kx.T)
        kl_all = kl_all.at[:, off:off + nP].set(-inv_r2 * jnp.sum(kx * kx, axis=-1)[None, :])
        kmix_all = kmix_all.at[off:off + nP, :].set(kf @ params["field_Wkey"][s])

    def energy_fn(T):
        q = T[:, :4]
        p = T[:, 4:]
        R = quat_to_rotmat(q)                                                        # (nT,3,3)

        # TransformPcd: rigidly transform query positions and (equivariantly) features.
        xq = jnp.einsum('tij,qj->tqi', R, query_x) + p[:, None, :]                   # (nT,nQ,3)
        f_sc = jnp.broadcast_to(query_f[:, :N_SCALARS], (nT, nQ, N_SCALARS))
        f_vec = query_f[:, N_SCALARS:].reshape(nQ, N_VECTORS, 3)
        f_vec_rot = jnp.einsum('tij,qcj->tqci', R, f_vec).reshape(nT, nQ, 3 * N_VECTORS)
        qf_t = jnp.concatenate([f_sc, f_vec_rot], axis=-1)                           # (nT,nQ,D)
        qf_eff = qf_t - base[:, None, :]      # fold hoisted bias + dst term into the residual

        # TODO(synk): the real key_tensor_field is an e3nn equivariant multiscale graph
        # convolution (radius graph + tensor products); surrogate = fused distance-softmax-mix
        # + energy-residual Pallas kernel (field features never hit HBM).
        # TODO(synk): for very large key clouds (np_pad >> 4k) the key-point axis should also
        # be tiled with an online softmax; here it is handled by the VMEM-derived row tile.
        e_rows = fused_energy(xq.reshape(nT * nQ, 3),
                              qf_eff.reshape(nT * nQ, QUERY_EDF_DIM),
                              kxT_all, kl_all, kmix_all)                             # (nT*nQ,)
        return jnp.einsum('q,tq->t', query_w, e_rows.reshape(nT, nQ))                # (nT,)

    # grad of logP = -E w.r.t. T (replaces torch.autograd.grad).
    grad = jax.grad(lambda T: -jnp.sum(energy_fn(T)))(Ts)                            # (nT,7)

    L = Ts[:, Q_INDICES] * Q_FACTOR                                                  # (nT,4,3)
    ang_vel = jnp.einsum('tia,ti->ta', L, grad[:, :4]) * ANG_MULT
    lin_vel = quaternion_apply(quaternion_invert(Ts[:, :4]), grad[:, 4:]) * LIN_MULT
    return ang_vel, lin_vel


# ------------------------------------- main ------------------------------------------------
if __name__ == "__main__":
    nT, nQ, nP = 4, 8, 16
    key = jax.random.PRNGKey(0)
    keys = jax.random.split(key, 8 + N_SCALES)
    k_params, k_q, k_p, k_time, k_qx, k_qf, k_qw, _unused = keys[:8]
    k_scales = keys[8:]

    params = init_params(k_params)

    quat = jax.random.normal(k_q, (nT, 4), jnp.float32)
    quat = quat / jnp.linalg.norm(quat, axis=-1, keepdims=True)
    trans = jax.random.normal(k_p, (nT, 3), jnp.float32)
    Ts = jnp.concatenate([quat, trans], axis=-1)                                     # (nT, 7)
    time = jax.random.uniform(k_time, (nT,), jnp.float32)

    query_x = jax.random.normal(k_qx, (nQ, 3), jnp.float32)
    query_f = jax.random.normal(k_qf, (nQ, QUERY_EDF_DIM), jnp.float32)
    query_w = jax.random.uniform(k_qw, (nQ,), jnp.float32)

    key_pcds = []
    for s in range(N_SCALES):
        kk1, kk2 = jax.random.split(k_scales[s])
        key_pcds.append((jax.random.normal(kk1, (nP, 3), jnp.float32),
                         jax.random.normal(kk2, (nP, KEY_FEAT_DIM), jnp.float32)))

    fwd = jax.jit(ebm_score_head_forward)
    ang_vel, lin_vel = fwd(params, Ts, key_pcds, query_x, query_f, query_w, time)
    jax.block_until_ready((ang_vel, lin_vel))
    assert ang_vel.shape == (nT, 3) and lin_vel.shape == (nT, 3)
    assert bool(jnp.all(jnp.isfinite(ang_vel))) and bool(jnp.all(jnp.isfinite(lin_vel)))
    print("KERNEL_OK")
</pallas_src>

<mosaic_0001>
module attributes {stable_mosaic.version = 11 : i64} {
  func.func @kernel(%arg0: i32, %arg1: memref<16x8xf32, #tpu.memory_space<vmem>>, %arg2: memref<16x32xf32, #tpu.memory_space<vmem>>, %arg3: memref<16x1xf32, #tpu.memory_space<vmem>>, %arg4: memref<8x256xf32, #tpu.memory_space<vmem>>, %arg5: memref<1x256xf32, #tpu.memory_space<vmem>>, %arg6: memref<256x32xf32, #tpu.memory_space<vmem>>, %arg7: memref<32x256xf32, #tpu.memory_space<vmem>>, %arg8: memref<256x8xf32, #tpu.memory_space<vmem>>, %arg9: memref<16x8xf32, #tpu.memory_space<vmem>>, %arg10: memref<16x32xf32, #tpu.memory_space<vmem>>) attributes {dimension_semantics = [#tpu.dimension_semantics<parallel>], iteration_bounds = array<i64: 2>, scalar_prefetch = 0 : i64, scratch_operands = 0 : i64, tpu.core_type = #tpu.core_type<tc>, window_params = [{transform_indices = @transform_0, window_bounds = array<i64: 16, 8>}, {transform_indices = @transform_1, window_bounds = array<i64: 16, 32>}, {transform_indices = @transform_2, window_bounds = array<i64: 16, 1>}, {pipeline_mode = #tpu.pipeline_mode<synchronous>, transform_indices = @transform_3, window_bounds = array<i64: 8, 256>}, {pipeline_mode = #tpu.pipeline_mode<synchronous>, transform_indices = @transform_4, window_bounds = array<i64: 1, 256>}, {pipeline_mode = #tpu.pipeline_mode<synchronous>, transform_indices = @transform_5, window_bounds = array<i64: 256, 32>}, {pipeline_mode = #tpu.pipeline_mode<synchronous>, transform_indices = @transform_6, window_bounds = array<i64: 32, 256>}, {pipeline_mode = #tpu.pipeline_mode<synchronous>, transform_indices = @transform_7, window_bounds = array<i64: 256, 8>}, {transform_indices = @transform_8, window_bounds = array<i64: 16, 8>}, {transform_indices = @transform_9, window_bounds = array<i64: 16, 32>}]} {
    %c0 = arith.constant 0 : index
    %c0_0 = arith.constant 0 : index
    %0 = vector.load %arg1[%c0, %c0_0] : memref<16x8xf32, #tpu.memory_space<vmem>>, vector<16x8xf32>
    %c0_1 = arith.constant 0 : index
    %c0_2 = arith.constant 0 : index
    %1 = vector.load %arg4[%c0_1, %c0_2] : memref<8x256xf32, #tpu.memory_space<vmem>>, vector<8x256xf32>
    %cst = arith.constant dense<0.000000e+00> : vector<16x256xf32>
    %2 = tpu.matmul %0, %1, %cst {dimension_numbers = #tpu.dot_dimension_numbers<[1], [0], [0], [1], [0, 0, 1, 1], [], []>} : vector<16x8xf32>, vector<8x256xf32>, vector<16x256xf32> -> vector<16x256xf32>
    %c0_3 = arith.constant 0 : index
    %c0_4 = arith.constant 0 : index
    %3 = vector.load %arg5[%c0_3, %c0_4] : memref<1x256xf32, #tpu.memory_space<vmem>>, vector<1x256xf32>
    %4 = vector.broadcast %3 : vector<1x256xf32> to vector<16x256xf32>
    %5 = arith.addf %2, %4 : vector<16x256xf32>
    %6 = vector.extract_strided_slice %5 {offsets = [0, 0], sizes = [16, 128], strides = [1, 1]} : vector<16x256xf32> to vector<16x128xf32>
    %cst_5 = arith.constant dense<0xFF800000> : vector<16xf32>
    %7 = vector.multi_reduction <maximumf>, %6, %cst_5 [1] : vector<16x128xf32> to vector<16xf32>
    %8 = vector.shape_cast %7 : vector<16xf32> to vector<16x1xf32>
    %9 = vector.broadcast %8 : vector<16x1xf32> to vector<16x128xf32>
    %10 = arith.subf %6, %9 : vector<16x128xf32>
    %11 = math.exp %10 : vector<16x128xf32>
    %cst_6 = arith.constant dense<0.000000e+00> : vector<16xf32>
    %12 = vector.multi_reduction <add>, %11, %cst_6 [1] : vector<16x128xf32> to vector<16xf32>
    %13 = vector.shape_cast %12 : vector<16xf32> to vector<16x1xf32>
    %14 = vector.broadcast %13 : vector<16x1xf32> to vector<16x128xf32>
    %15 = arith.divf %11, %14 : vector<16x128xf32>
    %16 = vector.extract_strided_slice %5 {offsets = [0, 128], sizes = [16, 128], strides = [1, 1]} : vector<16x256xf32> to vector<16x128xf32>
    %cst_7 = arith.constant dense<0xFF800000> : vector<16xf32>
    %17 = vector.multi_reduction <maximumf>, %16, %cst_7 [1] : vector<16x128xf32> to vector<16xf32>
    %18 = vector.shape_cast %17 : vector<16xf32> to vector<16x1xf32>
    %19 = vector.broadcast %18 : vector<16x1xf32> to vector<16x128xf32>
    %20 = arith.subf %16, %19 : vector<16x128xf32>
    %21 = math.exp %20 : vector<16x128xf32>
    %cst_8 = arith.constant dense<0.000000e+00> : vector<16xf32>
    %22 = vector.multi_reduction <add>, %21, %cst_8 [1] : vector<16x128xf32> to vector<16xf32>
    %23 = vector.shape_cast %22 : vector<16xf32> to vector<16x1xf32>
    %24 = vector.broadcast %23 : vector<16x1xf32> to vector<16x128xf32>
    %25 = arith.divf %21, %24 : vector<16x128xf32>
    %26 = tpu.concatenate %15, %25 in 1 : vector<16x128xf32>, vector<16x128xf32> -> vector<16x256xf32>
    %c0_9 = arith.constant 0 : index
    %c0_10 = arith.constant 0 : index
    %27 = vector.load %arg6[%c0_9, %c0_10] : memref<256x32xf32, #tpu.memory_space<vmem>>, vector<256x32xf32>
    %cst_11 = arith.constant dense<0.000000e+00> : vector<16x32xf32>
    %28 = tpu.matmul %26, %27, %cst_11 {dimension_numbers = #tpu.dot_dimension_numbers<[1], [0], [0], [1], [0, 0, 1, 1], [], []>} : vector<16x256xf32>, vector<256x32xf32>, vector<16x32xf32> -> vector<16x32xf32>
    %c0_12 = arith.constant 0 : index
    %c0_13 = arith.constant 0 : index
    %29 = vector.load %arg2[%c0_12, %c0_13] : memref<16x32xf32, #tpu.memory_space<vmem>>, vector<16x32xf32>
    %30 = arith.subf %28, %29 : vector<16x32xf32>
    %c0_14 = arith.constant 0 : index
    %c0_15 = arith.constant 0 : index
    %31 = vector.load %arg3[%c0_14, %c0_15] : memref<16x1xf32, #tpu.memory_space<vmem>>, vector<16x1xf32>
    %cst_16 = arith.constant 6.250000e-02 : f32
    %32 = vector.broadcast %cst_16 : f32 to vector<16x1xf32>
    %33 = arith.mulf %32, %31 : vector<16x1xf32>
    %34 = vector.broadcast %33 : vector<16x1xf32> to vector<16x32xf32>
    %35 = arith.mulf %34, %30 : vector<16x32xf32>
    %cst_17 = arith.constant 0.000000e+00 : f32
    %36 = vector.broadcast %cst_17 : f32 to vector<16x32xf32>
    %37 = arith.subf %36, %35 : vector<16x32xf32>
    %c0_18 = arith.constant 0 : index
    %c0_19 = arith.constant 0 : index
    %38 = vector.load %arg10[%c0_18, %c0_19] : memref<16x32xf32, #tpu.memory_space<vmem>>, vector<16x32xf32>
    tpu.vector_store %arg10[%c0_18, %c0_19], %37 {strides = array<i32>} : memref<16x32xf32, #tpu.memory_space<vmem>>, vector<16x32xf32>,
    %c0_20 = arith.constant 0 : index
    %c0_21 = arith.constant 0 : index
    %39 = vector.load %arg7[%c0_20, %c0_21] : memref<32x256xf32, #tpu.memory_space<vmem>>, vector<32x256xf32>
    %cst_22 = arith.constant dense<0.000000e+00> : vector<16x256xf32>
    %40 = tpu.matmul %35, %39, %cst_22 {dimension_numbers = #tpu.dot_dimension_numbers<[1], [0], [0], [1], [0, 0, 1, 1], [], []>} : vector<16x32xf32>, vector<32x256xf32>, vector<16x256xf32> -> vector<16x256xf32>
    %41 = vector.extract_strided_slice %40 {offsets = [0, 0], sizes = [16, 128], strides = [1, 1]} : vector<16x256xf32> to vector<16x128xf32>
    %42 = arith.mulf %41, %15 : vector<16x128xf32>
    %cst_23 = arith.constant dense<0.000000e+00> : vector<16xf32>
    %43 = vector.multi_reduction <add>, %42, %cst_23 [1] : vector<16x128xf32> to vector<16xf32>
    %44 = vector.shape_cast %43 : vector<16xf32> to vector<16x1xf32>
    %45 = vector.broadcast %44 : vector<16x1xf32> to vector<16x128xf32>
    %46 = arith.subf %41, %45 : vector<16x128xf32>
    %47 = arith.mulf %15, %46 : vector<16x128xf32>
    %48 = vector.extract_strided_slice %40 {offsets = [0, 128], sizes = [16, 128], strides = [1, 1]} : vector<16x256xf32> to vector<16x128xf32>
    %49 = arith.mulf %48, %25 : vector<16x128xf32>
    %cst_24 = arith.constant dense<0.000000e+00> : vector<16xf32>
    %50 = vector.multi_reduction <add>, %49, %cst_24 [1] : vector<16x128xf32> to vector<16xf32>
    %51 = vector.shape_cast %50 : vector<16xf32> to vector<16x1xf32>
    %52 = vector.broadcast %51 : vector<16x1xf32> to vector<16x128xf32>
    %53 = arith.subf %48, %52 : vector<16x128xf32>
    %54 = arith.mulf %25, %53 : vector<16x128xf32>
    %55 = tpu.concatenate %47, %54 in 1 : vector<16x128xf32>, vector<16x128xf32> -> vector<16x256xf32>
    %c0_25 = arith.constant 0 : index
    %c0_26 = arith.constant 0 : index
    %56 = vector.load %arg8[%c0_25, %c0_26] : memref<256x8xf32, #tpu.memory_space<vmem>>, vector<256x8xf32>
    %cst_27 = arith.constant dense<0.000000e+00> : vector<16x8xf32>
    %57 = tpu.matmul %55, %56, %cst_27 {dimension_numbers = #tpu.dot_dimension_numbers<[1], [0], [0], [1], [0, 0, 1, 1], [], []>} : vector<16x256xf32>, vector<256x8xf32>, vector<16x8xf32> -> vector<16x8xf32>
    %c0_28 = arith.constant 0 : index
    %c0_29 = arith.constant 0 : index
    %58 = vector.load %arg9[%c0_28, %c0_29] : memref<16x8xf32, #tpu.memory_space<vmem>>, vector<16x8xf32>
    tpu.vector_store %arg9[%c0_28, %c0_29], %57 {strides = array<i32>} : memref<16x8xf32, #tpu.memory_space<vmem>>, vector<16x8xf32>,
    return
  }
  func.func @transform_0(%arg0: i32) -> (i32, i32) {
    %c0_i32 = arith.constant 0 : i32
    %c0_i32_0 = arith.constant 0 : i32
    return %arg0, %c0_i32 : i32, i32
  }
  func.func @transform_1(%arg0: i32) -> (i32, i32) {
    %c0_i32 = arith.constant 0 : i32
    %c0_i32_0 = arith.constant 0 : i32
    return %arg0, %c0_i32 : i32, i32
  }
  func.func @transform_2(%arg0: i32) -> (i32, i32) {
    %c0_i32 = arith.constant 0 : i32
    %c0_i32_0 = arith.constant 0 : i32
    return %arg0, %c0_i32 : i32, i32
  }
  func.func @transform_3(%arg0: i32) -> (i32, i32) {
    %c0_i32 = arith.constant 0 : i32
    %c0_i32_0 = arith.constant 0 : i32
    %c0_i32_1 = arith.constant 0 : i32
    return %c0_i32, %c0_i32_0 : i32, i32
  }
  func.func @transform_4(%arg0: i32) -> (i32, i32) {
    %c0_i32 = arith.constant 0 : i32
    %c0_i32_0 = arith.constant 0 : i32
    %c0_i32_1 = arith.constant 0 : i32
    return %c0_i32, %c0_i32_0 : i32, i32
  }
  func.func @transform_5(%arg0: i32) -> (i32, i32) {
    %c0_i32 = arith.constant 0 : i32
    %c0_i32_0 = arith.constant 0 : i32
    %c0_i32_1 = arith.constant 0 : i32
    return %c0_i32, %c0_i32_0 : i32, i32
  }
  func.func @transform_6(%arg0: i32) -> (i32, i32) {
    %c0_i32 = arith.constant 0 : i32
    %c0_i32_0 = arith.constant 0 : i32
    %c0_i32_1 = arith.constant 0 : i32
    return %c0_i32, %c0_i32_0 : i32, i32
  }
  func.func @transform_7(%arg0: i32) -> (i32, i32) {
    %c0_i32 = arith.constant 0 : i32
    %c0_i32_0 = arith.constant 0 : i32
    %c0_i32_1 = arith.constant 0 : i32
    return %c0_i32, %c0_i32_0 : i32, i32
  }
  func.func @transform_8(%arg0: i32) -> (i32, i32) {
    %c0_i32 = arith.constant 0 : i32
    %c0_i32_0 = arith.constant 0 : i32
    return %arg0, %c0_i32 : i32, i32
  }
  func.func @transform_9(%arg0: i32) -> (i32, i32) {
    %c0_i32 = arith.constant 0 : i32
    %c0_i32_0 = arith.constant 0 : i32
    return %arg0, %c0_i32 : i32, i32
  }
}

</mosaic_0001>

<bundles_post_ra>
// kernel: split.0
= control target key start
LH: loop header
LB: loop body
LE: loop exit
PB: predicated region body
PF: predicated region fallthrough
CT: control target
= control target key end

     0   :  { %v3_v0 = vlaneseq  ;;  %s100_s0 = inlined_call_operand.vmem [shape: f32[4,8,32], index: 0, kind: input, shape index: {}]   ;;  %s101_s1 = inlined_call_operand.vmem [shape: bf16[4,8,24], index: 1, kind: output, shape index: {}]  }
   0x1   :  { %v2_v1 = vld [vmem:[%s100_s0] sm:$0xff]  ;;  %v48_v3 = vld [vmem:[%s100_s0 + $0x8] sm:$0xff]  ;;  %v50_v7 = vld [vmem:[%s100_s0 + $0x10] sm:$0xff] }
   0x2   :  { %v4_v2 = vand.u32 127, %v3_v0  ;;  %v52_v8 = vld [vmem:[%s100_s0 + $0x18] sm:$0xff]  ;;  %s65_s0 = smov 120  }
   0x4   :  { %vm5_vm0 = vcmp.lt.s32.totalorder %v4_v2, 8 }
   0x5   :  { %v6_v4 = vsel %vm5_vm0, 0, %v2_v1  ;;  %v17_v5 = vsel %vm5_vm0, 0, %v48_v3  ;;  %v29_v9 = vsel %vm5_vm0, 0, %v50_v7  ;;  %v41_v10 = vsel %vm5_vm0, 0, %v52_v8 }
   0x6   :  { %v55_v6 = vpack.i.bf16 %v17_v5, %v6_v4  ;;  %v60_v11 = vpack.i.bf16 %v41_v10, %v29_v9 }
   0x8   :  { %56 = vrot.lane.b32.xlu0 %v55_v6, %s65_s0 }
  0x10   :  { %61 = vrot.lane.b32.xlu0 %v60_v11, %s65_s0 }
  0x7a   :  { %v57_v12 = vpop.permute.xlu0 %56 }
  0x7b   :  { %v59_v13 = vunpack.i.h.bf16 %v57_v12  ;;  %v58_v14 = vunpack.i.l.bf16 %v57_v12 }
  0x7d   :  { %v22_v15 = vpack.c.bf16 0.0, %v59_v13  ;;  %v10_v16 = vpack.c.bf16 0.0, %v58_v14 }
  0x7f   :  { %49 = vst [vmem:[%s101_s1 + $0x4] sm:$0xf] %v22_v15 }
  0x80   :  { %11 = vst [vmem:[%s101_s1] sm:$0xf] %v10_v16 }
  0x82   :  { %v62_v17 = vpop.permute.xlu0 %61 }
  0x83   :  { %v64_v18 = vunpack.i.h.bf16 %v62_v17  ;;  %v63_v19 = vunpack.i.l.bf16 %v62_v17 }
  0x85   :  { %v46_v20 = vpack.c.bf16 0.0, %v64_v18  ;;  %v34_v21 = vpack.c.bf16 0.0, %v63_v19 }
  0x87   :  { %53 = vst [vmem:[%s101_s1 + $0xc] sm:$0xf] %v46_v20 }
  0x88   :  { %51 = vst [vmem:[%s101_s1 + $0x8] sm:$0xf] %v34_v21 }

</bundles_post_ra>
